<compile_context>
chip_gen: v7x
topology: tpu7x:2x2x1
jax: 0.10.0
libtpu: 0.0.40
codegen_flags: <defaults>
</compile_context>

<pallas_src>
import math

import jax
import jax.numpy as jnp
from jax.experimental import pallas as pl
from jax.experimental.pallas import tpu as pltpu


def _standardize_kernel(x_ref, sb_ref, o_ref):
    # Elementwise hot path: one f32 FMA per element on the VPU.
    # sb_ref is the resident (2, lane) [scale; bias] slab, broadcast over rows.
    x = x_ref[...].astype(jnp.float32)
    sb = sb_ref[...]
    o_ref[...] = (x * sb[0:1, :] + sb[1:2, :]).astype(o_ref.dtype)


def _affine(x, scale, bias):
    # Fused-XLA fallback / tail path: (x - mean) / std == x * scale + bias.
    return (x.astype(jnp.float32) * scale + bias).astype(x.dtype)


def pyg_standardize(x: jax.Array, mean: jax.Array, std: jax.Array,
                    *, target_tile_bytes: int = 1 << 20,
                    small_input_bytes: int = 128 << 10) -> jax.Array:
    """Standardize node features x[N, F] with feature-wise mean/std [F]."""
    n, f = x.shape
    assert mean.shape == (f,) and std.shape == (f,)
    itemsize = x.dtype.itemsize

    # Fold (x - mean) / std into x * scale + bias, stats kept in float32.
    # TODO(synk): no epsilon clamp on std, to exactly match the reference
    # module's (h - mean) / std semantics (std == 0 still yields inf/nan).
    scale = 1.0 / std.astype(jnp.float32)
    bias = -mean.astype(jnp.float32) * scale

    # ---- small-input fast path -------------------------------------------
    # pallas_call launch + pipeline prologue dwarfs the HBM traffic of tiny
    # graphs; plain XLA fuses the FMA and is strictly faster.
    if n * f * itemsize <= small_input_bytes:
        return _affine(x, scale, bias)

    # ---- lane-dense packing: pack k nodes per row so k*F % 128 == 0 --------
    k = 128 // math.gcd(f, 128)
    lane = k * f
    tail = n % k
    bulk = n - tail
    rows = bulk // k
    if rows == 0:  # pathological (n < k) yet above the byte threshold
        return _affine(x, scale, bias)

    # Contiguous prefix -> reshape without a pad copy; tail handled outside.
    x_packed = x[:bulk].reshape(rows, lane)

    # Single resident slab: row 0 = scale, row 1 = bias (tiled k times).
    sb = jnp.stack([jnp.tile(scale, k), jnp.tile(bias, k)])  # (2, lane) f32

    # ---- row tile sizing ----------------------------------------------------
    # ~target_tile_bytes of x.dtype per buffer; multiple of 32 rows keeps
    # sublane packing clean for f32 (8,128), bf16 (16,128) and int8 (32,128).
    bytes_per_row = lane * itemsize
    tile_rows = min(rows, max(32, target_tile_bytes // bytes_per_row))
    if rows >= 32:
        tile_rows = max(32, (tile_rows // 32) * 32)
    else:
        tile_rows = rows  # full-extent block allowed when rows < 32
    # v7x megacore: ensure >= 2 grid steps when there is enough work so the
    # "parallel" grid axis actually shards across both TensorCores.
    if rows >= 16:
        half = -(-rows // 2)          # cdiv(rows, 2)
        half = -(-half // 8) * 8      # round up to sublane multiple
        tile_rows = min(tile_rows, half)

    grid = (pl.cdiv(rows, tile_rows),)
    tile_bytes = tile_rows * bytes_per_row
    # in + out, double-buffered, plus slack; never below the common default.
    vmem_limit = int(max(16 << 20, 4 * tile_bytes + (1 << 20)))

    out_packed = pl.pallas_call(
        _standardize_kernel,
        out_shape=jax.ShapeDtypeStruct((rows, lane), x.dtype),
        grid_spec=pltpu.PrefetchScalarGridSpec(
            num_scalar_prefetch=0,
            grid=grid,
            in_specs=[
                pl.BlockSpec((tile_rows, lane), lambda i: (i, 0)),  # packed x
                pl.BlockSpec((2, lane), lambda i: (0, 0)),          # scale/bias (resident)
            ],
            out_specs=pl.BlockSpec((tile_rows, lane), lambda i: (i, 0)),
        ),
        compiler_params=pltpu.CompilerParams(
            dimension_semantics=("parallel",),
            vmem_limit_bytes=vmem_limit,
        ),
        cost_estimate=pl.CostEstimate(
            flops=2 * rows * lane,
            transcendentals=0,
            bytes_accessed=2 * rows * lane * itemsize + 2 * lane * 4,
        ),
        input_output_aliases={0: 0},  # reuse packed-x buffer for the output
    )(x_packed, sb)

    out = out_packed.reshape(bulk, f)
    if tail:
        out = jnp.concatenate([out, _affine(x[bulk:], scale, bias)], axis=0)
    return out


if __name__ == "__main__":
    key = jax.random.PRNGKey(0)
    k_x, k_m, k_s = jax.random.split(key, 3)

    num_features = 32
    # Deterministic synthetic "featurizer statistics" (module __init__ args).
    mean = jax.random.normal(k_m, (num_features,), dtype=jnp.float32)
    std = jax.random.uniform(k_s, (num_features,), dtype=jnp.float32,
                             minval=0.5, maxval=2.0)

    standardize = jax.jit(pyg_standardize)

    # (a) 2048 nodes: exercises the Pallas kernel path (grid >= 2 steps)
    # (b) 2049 nodes: ragged node count (tail handled outside the kernel)
    # (c) 128 nodes : tiny graph -> fused-XLA fast path
    for num_nodes in (2048, 2049, 128):
        kx = jax.random.fold_in(k_x, num_nodes)
        x = jax.random.normal(kx, (num_nodes, num_features), dtype=jnp.float32)
        out = jax.block_until_ready(standardize(x, mean, std))

        # Reference check against the module's broadcasting semantics.
        ref = (x - mean[None, :]) / std[None, :]
        assert out.shape == x.shape and out.dtype == x.dtype
        assert jnp.allclose(out, ref, rtol=1e-5, atol=1e-5)

    print("KERNEL_OK")
</pallas_src>

<mosaic_0001>
module attributes {stable_mosaic.version = 11 : i64} {
  func.func @_standardize_kernel(%arg0: i32, %arg1: memref<256x128xf32, #tpu.memory_space<vmem>>, %arg2: memref<2x128xf32, #tpu.memory_space<vmem>>, %arg3: memref<256x128xf32, #tpu.memory_space<vmem>>) attributes {dimension_semantics = [#tpu.dimension_semantics<parallel>], iteration_bounds = array<i64: 2>, scalar_prefetch = 0 : i64, scratch_operands = 0 : i64, tpu.core_type = #tpu.core_type<tc>, window_params = [{transform_indices = @transform_0, window_bounds = array<i64: 256, 128>}, {pipeline_mode = #tpu.pipeline_mode<synchronous>, transform_indices = @transform_1, window_bounds = array<i64: 2, 128>}, {transform_indices = @transform_2, window_bounds = array<i64: 256, 128>}]} {
    %c0 = arith.constant 0 : index
    %c0_0 = arith.constant 0 : index
    %0 = vector.load %arg1[%c0, %c0_0] : memref<256x128xf32, #tpu.memory_space<vmem>>, vector<256x128xf32>
    %c0_1 = arith.constant 0 : index
    %c0_2 = arith.constant 0 : index
    %1 = vector.load %arg2[%c0_1, %c0_2] : memref<2x128xf32, #tpu.memory_space<vmem>>, vector<2x128xf32>
    %2 = vector.extract_strided_slice %1 {offsets = [0, 0], sizes = [1, 128], strides = [1, 1]} : vector<2x128xf32> to vector<1x128xf32>
    %3 = vector.broadcast %2 : vector<1x128xf32> to vector<256x128xf32>
    %4 = arith.mulf %0, %3 : vector<256x128xf32>
    %5 = vector.extract_strided_slice %1 {offsets = [1, 0], sizes = [1, 128], strides = [1, 1]} : vector<2x128xf32> to vector<1x128xf32>
    %6 = vector.broadcast %5 : vector<1x128xf32> to vector<256x128xf32>
    %7 = arith.addf %4, %6 : vector<256x128xf32>
    %c0_3 = arith.constant 0 : index
    %c0_4 = arith.constant 0 : index
    %8 = vector.load %arg3[%c0_3, %c0_4] : memref<256x128xf32, #tpu.memory_space<vmem>>, vector<256x128xf32>
    tpu.vector_store %arg3[%c0_3, %c0_4], %7 {strides = array<i32>} : memref<256x128xf32, #tpu.memory_space<vmem>>, vector<256x128xf32>,
    return
  }
  func.func @transform_0(%arg0: i32) -> (i32, i32) {
    %c0_i32 = arith.constant 0 : i32
    %c0_i32_0 = arith.constant 0 : i32
    return %arg0, %c0_i32 : i32, i32
  }
  func.func @transform_1(%arg0: i32) -> (i32, i32) {
    %c0_i32 = arith.constant 0 : i32
    %c0_i32_0 = arith.constant 0 : i32
    %c0_i32_1 = arith.constant 0 : i32
    return %c0_i32, %c0_i32_0 : i32, i32
  }
  func.func @transform_2(%arg0: i32) -> (i32, i32) {
    %c0_i32 = arith.constant 0 : i32
    %c0_i32_0 = arith.constant 0 : i32
    return %arg0, %c0_i32 : i32, i32
  }
}

</mosaic_0001>

<bundles_post_ra>
// kernel: tile.17
= control target key start
LH: loop header
LB: loop body
LE: loop exit
PB: predicated region body
PF: predicated region fallthrough
CT: control target
= control target key end

     0   :  { %s22_s0 = inlined_call_operand.vmem [shape: f32[32], index: 0, kind: input, shape index: {}]   ;;  %s23_s1 = inlined_call_operand.vmem [shape: f32[4,32], index: 1, kind: output, shape index: {}]  }
   0x1   :  { %v4_v0 = vld [vmem:[%s22_s0] ss:$0 sm:$0xff] }
   0x2   :  { %5 = vst [vmem:[%s23_s1] sm:$0xf] %v4_v0 }

// kernel: tile.19
= control target key start
LH: loop header
LB: loop body
LE: loop exit
PB: predicated region body
PF: predicated region fallthrough
CT: control target
= control target key end

     0   :  { %vm7_vm0 = vcmask 261120   ;;  %s37_s8 = smov 32   ;;  %s38_s9 = smov 64   ;;  %vm13_vm1 = vcmask 1048320   ;;  %vm19_vm2 = vcmask 785920   ;;  %vm25_vm3 = vcmask 523520   ;;  %s55_s0 = inlined_call_operand.vmem [shape: f32[4,32], index: 0, kind: input, shape index: {}]   ;;  %s56_s1 = inlined_call_operand.vmem [shape: f32[1,128], index: 1, kind: output, shape index: {}]  }
   0x1   :  { %v4_v0 = vld [vmem:[%s55_s0] sm:$0xf]  ;;  %s36_s0 = smov 96  }
   0x2   :  { %5 = vst [vmem:[#allocation1] sm:$0xf] %v4_v0 }
   0x9   :  { %v10_v1 = vld [vmem:[#allocation1 + $0x3] sm:$0x1]   ;;  %v22_v2 = vld [vmem:[#allocation1 + $0x1] sm:$0x1]   ;;  %v6_v3 = vld [vmem:[#allocation1] sm:$0x1]  }
   0xa   :  { %11 = vrot.lane.b32.xlu0 %v10_v1, %s36_s0  ;;  %23 = vrot.lane.b32.xlu1 %v22_v2, %s37_s8  ;;  %v16_v4 = vld [vmem:[#allocation1 + $0x2] sm:$0x1]   ;;  %8 = vst.msk [vmem:[#allocation0] sm:$0x1] %vm7_vm0, %v6_v3  }
   0xe   :  { %17 = vrot.lane.b32.xlu0 %v16_v4, %s38_s9 }
  0x7c   :  { %v12_v5 = vpop.permute.xlu0 %11   ;;  %v24_v6 = vpop.permute.xlu1 %23  }
  0x7d   :  { %14 = vst.msk [vmem:[#allocation0] sm:$0x1] %vm13_vm1, %v12_v5  }
  0x80   :  { %v18_v7 = vpop.permute.xlu0 %17  }
  0x81   :  { %20 = vst.msk [vmem:[#allocation0] sm:$0x1] %vm19_vm2, %v18_v7  }
  0x82   :  { %26 = vst.msk [vmem:[#allocation0] sm:$0x1] %vm25_vm3, %v24_v6  }
  0x89   :  { %v30_v8 = vld [vmem:[#allocation0] sm:$0x1] }
  0x8a   :  { %32 = vst [vmem:[%s56_s1] sm:$0x1] %v30_v8 }

// kernel: pyg_standardize.1
= control target key start
LH: loop header
LB: loop body
LE: loop exit
PB: predicated region body
PF: predicated region fallthrough
CT: control target
= control target key end

     0   :  { %s382_s9 = smov 0   ;;  %s545_s0 = inlined_call_operand.vmem [shape: f32[512,128], index: 0, kind: input, shape index: {}, may-alias: {0,2}]   ;;  %s546_s1 = inlined_call_operand.vmem [shape: f32[2,128], index: 1, kind: input, shape index: {}]   ;;  %s547_s2 = inlined_call_operand.vmem [shape: f32[512,128], index: 2, kind: output, shape index: {}, may-alias: {0,2}]  }
   0x1 LB: > { %s340_s10 = sadd.s32 4294967295, %s365_s9   ;;  %p344_p0 = scmp.ge.s32.totalorder %s365_s9, 1  ;;  %s365_s9 = sphi %s382_s9, %s12_s9  }
   0x2   : > { %p113_p1 = scmp.lt.s32.totalorder %s365_s9, 3 }
   0x4   : > { %p114_p2 = pnand %p344_p0, %p113_p1 }
   0x5   : > { %s345_s11 = sshll.u32 (!%p114_p2), %s340_s10, 5  ;;  %v180_v0 = vlaneseq (!%p114_p2)  ;;  %v179_v2 = vld [vmem:[%s546_s1] sm:$0x3] (!%p114_p2) }
   0x6   : > { %117 = sbr.rel (%p114_p2) target bundleno = 43 (0x2b), region = 28  ;;  %p136_p3 = scmp.lt.s32.totalorder (!%p114_p2), %s345_s11, 63 }
   0x7   : > { %v181_v1 = vshrl.u32 (!%p114_p2), %v180_v0, 7 }
   0x9   : > { %v182_v3 = vsub.s32 (!%p114_p2), 0, %v181_v1  ;;  %v218_v4 = vsub.s32 (!%p114_p2), 1, %v181_v1 }
   0xb   : > { %v403_v5 = vrot.slane (!%p114_p2), %v179_v2, %v182_v3  ;;  %v405_v6 = vrot.slane (!%p114_p2), %v179_v2, %v218_v4 }
   0xd   : > { %s549_s11 = smov (!%p136_p3, %s345_s11), 63 }
   0xe   : > { %s346_s14 = sshll.u32 %s549_s11, 3 }
   0xf   : > { %s401_s17 = scalar_lea.vmem %s545_s0, %s346_s14  ;;  %s461_s20 = scalar_lea.vmem %s547_s2, %s346_s14 }
  0x10   : > { %v147_v7 = vld [vmem:[%s401_s17] sm:$0xff]  ;;  %v148_v8 = vld [vmem:[%s401_s17 + $0x8] sm:$0xff]  ;;  %v149_v9 = vld [vmem:[%s401_s17 + $0x10] sm:$0xff] }
  0x11   : > { %v150_v10 = vld [vmem:[%s401_s17 + $0x18] sm:$0xff]  ;;  %v151_v11 = vld [vmem:[%s401_s17 + $0x20] sm:$0xff]  ;;  %v152_v12 = vld [vmem:[%s401_s17 + $0x28] sm:$0xff]  ;;  %v184_v13 = vmul.f32 %v403_v5, %v147_v7  ;;  %v185_v14 = vmul.f32 %v403_v5, %v148_v8  ;;  %v186_v15 = vmul.f32 %v403_v5, %v149_v9 }
  0x12   : > { %v153_v16 = vld [vmem:[%s401_s17 + $0x30] sm:$0xff]  ;;  %v154_v17 = vld [vmem:[%s401_s17 + $0x38] sm:$0xff]  ;;  %v155_v18 = vld [vmem:[%s401_s17 + $0x40] sm:$0xff]  ;;  %v187_v19 = vmul.f32 %v403_v5, %v150_v10  ;;  %v188_v20 = vmul.f32 %v403_v5, %v151_v11  ;;  %v189_v21 = vmul.f32 %v403_v5, %v152_v12 }
  0x13   : > { %v156_v22 = vld [vmem:[%s401_s17 + $0x48] sm:$0xff]  ;;  %v157_v23 = vld [vmem:[%s401_s17 + $0x50] sm:$0xff]  ;;  %v158_v24 = vld [vmem:[%s401_s17 + $0x58] sm:$0xff]  ;;  %v220_v25 = vadd.f32 %v405_v6, %v184_v13  ;;  %v221_v26 = vadd.f32 %v405_v6, %v185_v14  ;;  %v222_v27 = vadd.f32 %v405_v6, %v186_v15  ;;  %v190_v28 = vmul.f32 %v403_v5, %v153_v16 }
  0x14   : > { %v159_v29 = vld [vmem:[%s401_s17 + $0x60] sm:$0xff]  ;;  %v160_v30 = vld [vmem:[%s401_s17 + $0x68] sm:$0xff]  ;;  %v161_v31 = vld [vmem:[%s401_s17 + $0x70] sm:$0xff]  ;;  %v223_v32 = vadd.f32 %v405_v6, %v187_v19  ;;  %v224_v33 = vadd.f32 %v405_v6, %v188_v20  ;;  %v225_v34 = vadd.f32 %v405_v6, %v189_v21  ;;  %v191_v35 = vmul.f32 %v403_v5, %v154_v17 }
  0x15   : > { %v162_v36 = vld [vmem:[%s401_s17 + $0x78] sm:$0xff]  ;;  %v163_v37 = vld [vmem:[%s401_s17 + $0x80] sm:$0xff]  ;;  %v226_v38 = vadd.f32 %v405_v6, %v190_v28  ;;  %v192_v39 = vmul.f32 %v403_v5, %v155_v18  ;;  %v193_v40 = vmul.f32 %v403_v5, %v156_v22  ;;  %v194_v41 = vmul.f32 %v403_v5, %v157_v23  ;;  %v164_v42 = vld [vmem:[%s401_s17 + $0x88] sm:$0xff] }
  0x16   : > { %v165_v43 = vld [vmem:[%s401_s17 + $0x90] sm:$0xff]  ;;  %v166_v44 = vld [vmem:[%s401_s17 + $0x98] sm:$0xff]  ;;  %v227_v45 = vadd.f32 %v405_v6, %v191_v35  ;;  %v195_v46 = vmul.f32 %v403_v5, %v158_v24  ;;  %v196_v47 = vmul.f32 %v403_v5, %v159_v29  ;;  %v197_v48 = vmul.f32 %v403_v5, %v160_v30  ;;  %v167_v49 = vld [vmem:[%s401_s17 + $0xa0] sm:$0xff] }
  0x17   : > { %v168_v50 = vld [vmem:[%s401_s17 + $0xa8] sm:$0xff]  ;;  %v169_v51 = vld [vmem:[%s401_s17 + $0xb0] sm:$0xff]  ;;  %v228_v52 = vadd.f32 %v405_v6, %v192_v39  ;;  %v229_v53 = vadd.f32 %v405_v6, %v193_v40  ;;  %v230_v54 = vadd.f32 %v405_v6, %v194_v41  ;;  %v198_v55 = vmul.f32 %v403_v5, %v161_v31  ;;  %v170_v56 = vld [vmem:[%s401_s17 + $0xb8] sm:$0xff] }
  0x18   : > { %v171_v57 = vld [vmem:[%s401_s17 + $0xc0] sm:$0xff]  ;;  %v172_v58 = vld [vmem:[%s401_s17 + $0xc8] sm:$0xff]  ;;  %v231_v59 = vadd.f32 %v405_v6, %v195_v46  ;;  %v232_v60 = vadd.f32 %v405_v6, %v196_v47  ;;  %v233_v61 = vadd.f32 %v405_v6, %v197_v48  ;;  %v199_v62 = vmul.f32 %v403_v5, %v162_v36  ;;  %v173_v63 = vld [vmem:[%s401_s17 + $0xd0] sm:$0xff] }
  0x19   : > { %v174_v0 = vld [vmem:[%s401_s17 + $0xd8] sm:$0xff]  ;;  %v175_v1 = vld [vmem:[%s401_s17 + $0xe0] sm:$0xff]  ;;  %v234_v2 = vadd.f32 %v405_v6, %v198_v55  ;;  %v200_v3 = vmul.f32 %v403_v5, %v163_v37  ;;  %v201_v4 = vmul.f32 %v403_v5, %v164_v42  ;;  %v202_v7 = vmul.f32 %v403_v5, %v165_v43  ;;  %v176_v8 = vld [vmem:[%s401_s17 + $0xe8] sm:$0xff] }
  0x1a   : > { %v177_v9 = vld [vmem:[%s401_s17 + $0xf0] sm:$0xff]  ;;  %v178_v10 = vld [vmem:[%s401_s17 + $0xf8] sm:$0xff]  ;;  %v235_v11 = vadd.f32 %v405_v6, %v199_v62  ;;  %v203_v12 = vmul.f32 %v403_v5, %v166_v44  ;;  %v204_v13 = vmul.f32 %v403_v5, %v167_v49  ;;  %v205_v14 = vmul.f32 %v403_v5, %v168_v50 }
  0x1b   : > { %252 = vst [vmem:[%s461_s20] sm:$0xff] %v220_v25  ;;  %253 = vst [vmem:[%s461_s20 + $0x8] sm:$0xff] %v221_v26  ;;  %v236_v15 = vadd.f32 %v405_v6, %v200_v3  ;;  %v237_v16 = vadd.f32 %v405_v6, %v201_v4  ;;  %v238_v17 = vadd.f32 %v405_v6, %v202_v7 }
  0x1c   : > { %254 = vst [vmem:[%s461_s20 + $0x10] sm:$0xff] %v222_v27  ;;  %255 = vst [vmem:[%s461_s20 + $0x18] sm:$0xff] %v223_v32  ;;  %v206_v18 = vmul.f32 %v403_v5, %v169_v51  ;;  %v239_v19 = vadd.f32 %v405_v6, %v203_v12  ;;  %v240_v20 = vadd.f32 %v405_v6, %v204_v13 }
  0x1d   : > { %256 = vst [vmem:[%s461_s20 + $0x20] sm:$0xff] %v224_v33  ;;  %257 = vst [vmem:[%s461_s20 + $0x28] sm:$0xff] %v225_v34  ;;  %v241_v21 = vadd.f32 %v405_v6, %v205_v14  ;;  %v207_v22 = vmul.f32 %v403_v5, %v170_v56  ;;  %v208_v24 = vmul.f32 %v403_v5, %v171_v57 }
  0x1e   : > { %258 = vst [vmem:[%s461_s20 + $0x30] sm:$0xff] %v226_v38  ;;  %259 = vst [vmem:[%s461_s20 + $0x38] sm:$0xff] %v227_v45  ;;  %v242_v23 = vadd.f32 %v405_v6, %v206_v18  ;;  %v209_v25 = vmul.f32 %v403_v5, %v172_v58  ;;  %v210_v26 = vmul.f32 %v403_v5, %v173_v63 }
  0x1f   : > { %260 = vst [vmem:[%s461_s20 + $0x40] sm:$0xff] %v228_v52  ;;  %261 = vst [vmem:[%s461_s20 + $0x48] sm:$0xff] %v229_v53  ;;  %v243_v27 = vadd.f32 %v405_v6, %v207_v22  ;;  %v211_v28 = vmul.f32 %v403_v5, %v174_v0  ;;  %v212_v29 = vmul.f32 %v403_v5, %v175_v1 }
  0x20   : > { %262 = vst [vmem:[%s461_s20 + $0x50] sm:$0xff] %v230_v54  ;;  %263 = vst [vmem:[%s461_s20 + $0x58] sm:$0xff] %v231_v59  ;;  %v213_v30 = vmul.f32 %v403_v5, %v176_v8  ;;  %v244_v31 = vadd.f32 %v405_v6, %v208_v24  ;;  %v245_v32 = vadd.f32 %v405_v6, %v209_v25 }
  0x21   : > { %264 = vst [vmem:[%s461_s20 + $0x60] sm:$0xff] %v232_v60  ;;  %265 = vst [vmem:[%s461_s20 + $0x68] sm:$0xff] %v233_v61  ;;  %v246_v33 = vadd.f32 %v405_v6, %v210_v26  ;;  %v214_v34 = vmul.f32 %v403_v5, %v177_v9  ;;  %v247_v35 = vadd.f32 %v405_v6, %v211_v28 }
  0x22   : > { %266 = vst [vmem:[%s461_s20 + $0x70] sm:$0xff] %v234_v2  ;;  %267 = vst [vmem:[%s461_s20 + $0x78] sm:$0xff] %v235_v11  ;;  %v248_v36 = vadd.f32 %v405_v6, %v212_v29  ;;  %v249_v37 = vadd.f32 %v405_v6, %v213_v30  ;;  %v215_v38 = vmul.f32 %v403_v5, %v178_v10 }
  0x23   : > { %268 = vst [vmem:[%s461_s20 + $0x80] sm:$0xff] %v236_v15  ;;  %269 = vst [vmem:[%s461_s20 + $0x88] sm:$0xff] %v237_v16  ;;  %v250_v39 = vadd.f32 %v405_v6, %v214_v34 }
  0x24   : > { %270 = vst [vmem:[%s461_s20 + $0x90] sm:$0xff] %v238_v17  ;;  %271 = vst [vmem:[%s461_s20 + $0x98] sm:$0xff] %v239_v19  ;;  %v251_v40 = vadd.f32 %v405_v6, %v215_v38 }
  0x25   : > { %272 = vst [vmem:[%s461_s20 + $0xa0] sm:$0xff] %v240_v20  ;;  %273 = vst [vmem:[%s461_s20 + $0xa8] sm:$0xff] %v241_v21 }
  0x26   : > { %274 = vst [vmem:[%s461_s20 + $0xb0] sm:$0xff] %v242_v23  ;;  %275 = vst [vmem:[%s461_s20 + $0xb8] sm:$0xff] %v243_v27 }
  0x27   : > { %276 = vst [vmem:[%s461_s20 + $0xc0] sm:$0xff] %v244_v31  ;;  %277 = vst [vmem:[%s461_s20 + $0xc8] sm:$0xff] %v245_v32 }
  0x28   : > { %278 = vst [vmem:[%s461_s20 + $0xd0] sm:$0xff] %v246_v33  ;;  %279 = vst [vmem:[%s461_s20 + $0xd8] sm:$0xff] %v247_v35 }
  0x29   : > { %280 = vst [vmem:[%s461_s20 + $0xe0] sm:$0xff] %v248_v36  ;;  %281 = vst [vmem:[%s461_s20 + $0xe8] sm:$0xff] %v249_v37 }
  0x2a   : > { %282 = vst [vmem:[%s461_s20 + $0xf0] sm:$0xff] %v250_v39  ;;  %283 = vst [vmem:[%s461_s20 + $0xf8] sm:$0xff] %v251_v40 }
  0x2b PF: > { %s12_s9 = sadd.s32 1, %s365_s9  }
  0x2c   : > { %p9_p4 = scmp.ge.s32.totalorder %s12_s9, 4  }
  0x2e   :  { %11 = sbr.rel (!%p9_p4) target bundleno = 1 (0x1), region = 58 }

</bundles_post_ra>
